<compile_context>
chip_gen: v6e
topology: v6e:2x2x1
jax: 0.10.0
libtpu: 0.0.40
codegen_flags: <defaults>
</compile_context>

<pallas_src>
import functools
import math

import jax
import jax.numpy as jnp
from jax import lax
from jax.experimental import pallas as pl
from jax.experimental.pallas import tpu as pltpu

MIN_SIGMA = 1e-05  # unused in the eval forward; kept for parity with the module.


def _round_up(x, m):
    return ((x + m - 1) // m) * m


def _var_conv_kernel(lhs_ref, w_ref, b_ref, o_ref, *, c_out):
    """One grid step: (m_tile, Kp) x (Kp, CP) MXU matmul + f32 bias/ReLU epilogue.

    lhs_ref: (m_tile, Kp)   lane-dense im2col rows (zero-padded K)
    w_ref  : (Kp, CP)       flattened conv weight, Cout zero-padded to CP
    b_ref  : (1, CP)        bias (f32), zero-padded to CP
    o_ref  : (m_tile, c_out) only the real output channels are stored
    """
    acc = jnp.dot(lhs_ref[...], w_ref[...], preferred_element_type=jnp.float32)
    act = jnp.maximum(acc + b_ref[...], 0.0)          # bias + ReLU in f32 (v5e-safe)
    # CP padding lives only inside the matmul; slice it off before the store so
    # HBM writeback is exactly the useful bytes.
    o_ref[...] = act[:, :c_out].astype(o_ref.dtype)


def var_conv_forward(x_nchw, mean, mean_b, padding, *,
                     stride=(1, 1), dilation=(1, 1), groups=1,
                     m_tile=4096, compute_dtype=jnp.bfloat16):
    """Eval-mode VarConv forward: relu(conv2d(x, mean, mean_b, padding=padding)).

    x_nchw : (N, C_in, H, W)          float32
    mean   : (C_out, C_in, KH, KW)    float32  (conv weight)
    mean_b : (C_out,)                 float32  (conv bias)
    padding: int (symmetric spatial padding)
    m_tile : im2col rows per grid step (primary perf knob; ~16 images at 16x16)
    returns: (N, C_out, H_out, W_out) float32
    """
    # Only the configuration the module's eval hot path uses is kernelized.
    assert tuple(stride) == (1, 1) and tuple(dilation) == (1, 1) and groups == 1, \
        "VarConv Pallas kernel supports stride=1, dilation=1, groups=1 only"

    N, C_in, H, W = x_nchw.shape
    C_out, C_in_w, KH, KW = mean.shape
    assert C_in_w == C_in
    HO = H + 2 * padding - (KH - 1)
    WO = W + 2 * padding - (KW - 1)
    K = KH * KW * C_in
    Kp = _round_up(K, 128)           # lane-dense contraction dim
    CP = _round_up(C_out, 128)       # matmul-internal channel padding only

    # ---- wrapper-side im2col (layout plumbing, handled by XLA) -------------
    x_nhwc = jnp.transpose(x_nchw, (0, 2, 3, 1)).astype(compute_dtype)
    x_pad = jnp.pad(x_nhwc, ((0, 0), (padding, padding), (padding, padding), (0, 0)))
    taps = [x_pad[:, kh:kh + HO, kw:kw + WO, :]                 # (N, HO, WO, Cin)
            for kh in range(KH) for kw in range(KW)]            # (kh, kw) major order
    patches = jnp.concatenate(taps, axis=-1)                    # (N, HO, WO, K)
    M = N * HO * WO
    lhs = patches.reshape(M, K)

    # Grid over rows of the im2col matrix.  Keep >= 2 steps so v7x's two
    # TensorCores both get work on the "parallel" axis; round the tile to the
    # (8, 128) sublane constraint.  Padded rows compute relu(bias) garbage and
    # are sliced off below (tiny, and keeps the grid exact).
    n_steps = max(2, pl.cdiv(M, m_tile))
    mt = _round_up(pl.cdiv(M, n_steps), 8)
    Mp = mt * n_steps
    lhs = jnp.pad(lhs, ((0, Mp - M), (0, Kp - K)))

    # (Cout, Cin, KH, KW) -> (Kp, CP).  K order = (kh, kw, cin) to match `taps`.
    w_flat = jnp.transpose(mean, (2, 3, 1, 0)).reshape(K, C_out)
    w_flat = jnp.pad(w_flat, ((0, Kp - K), (0, CP - C_out))).astype(compute_dtype)
    b_pad = jnp.pad(mean_b, (0, CP - C_out)).reshape(1, CP).astype(jnp.float32)

    kernel = functools.partial(_var_conv_kernel, c_out=C_out)

    # NOTE: the weight/bias index_maps are constant across the grid; at this
    # size (Kp*CP bf16 = 32 KiB) double-buffering them is negligible VMEM, so
    # pipeline_mode=pl.Buffered(1) is not worth it — revisit at production Cout.
    out2d = pl.pallas_call(
        kernel,
        out_shape=jax.ShapeDtypeStruct((Mp, C_out), compute_dtype),
        grid=(n_steps,),
        in_specs=[
            pl.BlockSpec((mt, Kp), lambda i: (i, 0)),
            pl.BlockSpec((Kp, CP), lambda i: (0, 0)),
            pl.BlockSpec((1, CP), lambda i: (0, 0)),
        ],
        out_specs=pl.BlockSpec((mt, C_out), lambda i: (i, 0)),
        compiler_params=pltpu.CompilerParams(
            dimension_semantics=("parallel",)),
    )(lhs, w_flat, b_pad)

    # Drop row padding, restore NCHW (no channel slice needed: only real
    # channels were ever written).
    out = out2d[:M].reshape(N, HO, WO, C_out)
    return jnp.transpose(out, (0, 3, 1, 2)).astype(x_nchw.dtype)


def init_var_conv_params(key, in_channels, out_channels, KH=3, KW=3,
                         init_log_sigma=-4.0):
    """Deterministic re-implementation of the module __init__ parameter init."""
    k_w, k_b = jax.random.split(key)
    fan_in = in_channels * KH * KW
    # kaiming_uniform_(a=sqrt(5)) -> uniform(-sqrt(6/(6*fan_in)), +...)
    bound_w = math.sqrt(6.0 / ((1.0 + 5.0) * fan_in))
    mean = jax.random.uniform(k_w, (out_channels, in_channels, KH, KW),
                              minval=-bound_w, maxval=bound_w, dtype=jnp.float32)
    bound_b = 1.0 / math.sqrt(fan_in)
    mean_b = jax.random.uniform(k_b, (out_channels,),
                                minval=-bound_b, maxval=bound_b, dtype=jnp.float32)
    # log_sigma params exist in the module but are unused by the eval forward.
    log_sigma = jnp.full((out_channels, in_channels, KH, KW), init_log_sigma, jnp.float32)
    log_sigma_b = jnp.full((out_channels,), init_log_sigma, jnp.float32)
    return mean, mean_b, log_sigma, log_sigma_b


if __name__ == "__main__":
    key = jax.random.PRNGKey(0)
    k_x, k_p = jax.random.split(key)

    N, C_in, H, W = 2, 4, 16, 16
    C_out, padding = 8, 1

    x = jax.random.normal(k_x, (N, C_in, H, W), dtype=jnp.float32)
    mean, mean_b, _, _ = init_var_conv_params(k_p, C_in, C_out, init_log_sigma=-4.0)

    # Reference: XLA conv with identical eval-mode semantics.
    ref = lax.conv_general_dilated(
        x, mean, window_strides=(1, 1), padding=[(padding, padding)] * 2,
        dimension_numbers=("NCHW", "OIHW", "NCHW"))
    ref = jnp.maximum(ref + mean_b[None, :, None, None], 0.0)

    # f32 compute path (matches the PyTorch module within f32 round-off).
    out_f32 = var_conv_forward(x, mean, mean_b, padding,
                               compute_dtype=jnp.float32)
    out_f32 = jax.block_until_ready(out_f32)
    assert out_f32.shape == (N, C_out, H, W)
    assert jnp.allclose(out_f32, ref, atol=1e-4, rtol=1e-4)

    # bf16-inputs / f32-accumulate path (MXU-peak configuration for v6e/v7x).
    out_bf16 = var_conv_forward(x, mean, mean_b, padding,
                                compute_dtype=jnp.bfloat16)
    out_bf16 = jax.block_until_ready(out_bf16)
    assert out_bf16.shape == (N, C_out, H, W)
    assert jnp.allclose(out_bf16, ref, atol=3e-2, rtol=3e-2)

    print("KERNEL_OK")
</pallas_src>

<mosaic_0001>
module attributes {stable_mosaic.version = 11 : i64} {
  func.func @_var_conv_kernel(%arg0: i32, %arg1: memref<256x128xf32, #tpu.memory_space<vmem>>, %arg2: memref<128x128xf32, #tpu.memory_space<vmem>>, %arg3: memref<1x128xf32, #tpu.memory_space<vmem>>, %arg4: memref<256x8xf32, #tpu.memory_space<vmem>>) attributes {dimension_semantics = [#tpu.dimension_semantics<parallel>], iteration_bounds = array<i64: 2>, scalar_prefetch = 0 : i64, scratch_operands = 0 : i64, tpu.core_type = #tpu.core_type<tc>, window_params = [{transform_indices = @transform_0, window_bounds = array<i64: 256, 128>}, {pipeline_mode = #tpu.pipeline_mode<synchronous>, transform_indices = @transform_1, window_bounds = array<i64: 128, 128>}, {pipeline_mode = #tpu.pipeline_mode<synchronous>, transform_indices = @transform_2, window_bounds = array<i64: 1, 128>}, {transform_indices = @transform_3, window_bounds = array<i64: 256, 8>}]} {
    %c0 = arith.constant 0 : index
    %c0_0 = arith.constant 0 : index
    %0 = vector.load %arg1[%c0, %c0_0] : memref<256x128xf32, #tpu.memory_space<vmem>>, vector<256x128xf32>
    %c0_1 = arith.constant 0 : index
    %c0_2 = arith.constant 0 : index
    %1 = vector.load %arg2[%c0_1, %c0_2] : memref<128x128xf32, #tpu.memory_space<vmem>>, vector<128x128xf32>
    %cst = arith.constant dense<0.000000e+00> : vector<256x128xf32>
    %2 = tpu.matmul %0, %1, %cst {dimension_numbers = #tpu.dot_dimension_numbers<[1], [0], [0], [1], [0, 0, 1, 1], [], []>} : vector<256x128xf32>, vector<128x128xf32>, vector<256x128xf32> -> vector<256x128xf32>
    %c0_3 = arith.constant 0 : index
    %c0_4 = arith.constant 0 : index
    %3 = vector.load %arg3[%c0_3, %c0_4] : memref<1x128xf32, #tpu.memory_space<vmem>>, vector<1x128xf32>
    %4 = vector.broadcast %3 : vector<1x128xf32> to vector<256x128xf32>
    %5 = arith.addf %2, %4 : vector<256x128xf32>
    %cst_5 = arith.constant 0.000000e+00 : f32
    %6 = vector.broadcast %cst_5 : f32 to vector<256x128xf32>
    %7 = arith.maximumf %5, %6 : vector<256x128xf32>
    %8 = vector.extract_strided_slice %7 {offsets = [0, 0], sizes = [256, 8], strides = [1, 1]} : vector<256x128xf32> to vector<256x8xf32>
    %c0_6 = arith.constant 0 : index
    %c0_7 = arith.constant 0 : index
    %9 = vector.load %arg4[%c0_6, %c0_7] : memref<256x8xf32, #tpu.memory_space<vmem>>, vector<256x8xf32>
    tpu.vector_store %arg4[%c0_6, %c0_7], %8 {strides = array<i32>} : memref<256x8xf32, #tpu.memory_space<vmem>>, vector<256x8xf32>,
    return
  }
  func.func @transform_0(%arg0: i32) -> (i32, i32) {
    %c0_i32 = arith.constant 0 : i32
    %c0_i32_0 = arith.constant 0 : i32
    return %arg0, %c0_i32 : i32, i32
  }
  func.func @transform_1(%arg0: i32) -> (i32, i32) {
    %c0_i32 = arith.constant 0 : i32
    %c0_i32_0 = arith.constant 0 : i32
    %c0_i32_1 = arith.constant 0 : i32
    return %c0_i32, %c0_i32_0 : i32, i32
  }
  func.func @transform_2(%arg0: i32) -> (i32, i32) {
    %c0_i32 = arith.constant 0 : i32
    %c0_i32_0 = arith.constant 0 : i32
    %c0_i32_1 = arith.constant 0 : i32
    return %c0_i32, %c0_i32_0 : i32, i32
  }
  func.func @transform_3(%arg0: i32) -> (i32, i32) {
    %c0_i32 = arith.constant 0 : i32
    %c0_i32_0 = arith.constant 0 : i32
    return %arg0, %c0_i32 : i32, i32
  }
}

</mosaic_0001>

<bundles_post_ra>
// kernel: tpu_custom_call.1
= control target key start
LH: loop header
LB: loop body
LE: loop exit
PB: predicated region body
PF: predicated region fallthrough
CT: control target
= control target key end

     0   :  { %8 = vsyncpa [#allocation3], 0  ;;  %s1249_s0 = inlined_call_operand.hbm [shape: f32[512,128], index: 0, kind: input, shape index: {}]   ;;  %s1250_s1 = inlined_call_operand.hbm [shape: f32[128,128], index: 1, kind: input, shape index: {}]   ;;  %s1251_s2 = inlined_call_operand.vmem [shape: f32[1,128], index: 2, kind: input, shape index: {}]   ;;  %s1252_s3 = inlined_call_operand.vmem [shape: f32[512,8], index: 3, kind: output, shape index: {}]  }
   0x1   :  { %10 = vsyncpa [#allocation3 + $0x1], 0 }
   0x2   :  { %11 = vsyncpa [#allocation5], 0  ;;  %s977_s12 = smov 0   ;;  %s979_s13 = smov 0  }
   0x3   :  { %s981_s14 = smov 0   ;;  %s983_s15 = smov 0  }
   0x4 LB: > { %s630_s16 = sadd.s32 4294967295, %s951_s15   ;;  %p37_p0 = scmp.ne.s32.totalorder %s943_s13, %s939_s12  ;;  %s951_s15 = sphi %s983_s15, %s1268_s15   ;;  %s947_s14 = sphi %s981_s14, %s1267_s14   ;;  %s943_s13 = sphi %s979_s13, %s1266_s13   ;;  %s939_s12 = sphi %s977_s12, %s1265_s12  }
   0x5   : > { %p999_p1 = scmp.eq.s32.totalorder %s630_s16, 0  ;;  %p632_p2 = scmp.ge.s32.totalorder %s951_s15, 1 }
   0x6   : > { %p116_p3 = scmp.lt.s32.totalorder %s951_s15, 3  ;;  %s953_s20 = smov [#allocation4]  }
   0x7   : > { %s1257_s17 = scalar_select %p999_p1, 1, 0 }
   0x8   : > { %p1007_p4 = por %p999_p1, %p37_p0  ;;  %p1011_p5 = pnand %p632_p2, %p116_p3 }
   0x9   : > { %s128_s21 = sshll.u32 %s953_s20, 4  ;;  %s1024_s23 = sadd.s32 1, %s951_s15   ;;  %s129_s21 = int_to_ptr.vmem [resolvable:$true] %s128_s21 }
   0xa   : > { %s1258_s18 = scalar_select %p1007_p4, 1, 0 }
   0xb   : > { %s1259_s19 = scalar_select %p1011_p5, 1, 0 }
   0xc   : > { %p813_p6 = pneg %p1011_p5  ;;  %s24_s24 = sadd.s32 1, %s947_s14 }
   0xd   : > { %s21_s25 = ssub.s32 %s951_s15, %s1024_s23  ;;  %s870_s26 = scalar_lea.vmem %s129_s21, 2048 }
   0xe   : > { %p1019_p7 = pnand %p813_p6, %p999_p1  ;;  %p871_p9 = scmp.ne.s32.totalorder %s129_s21, %s870_s26 }
   0xf   : > { %p878_p12 = scmp.lt.s32.totalorder %s129_s21, %s129_s21  ;;  %p879_p13 = scmp.lt.s32.totalorder %s870_s26, %s870_s26 }
  0x10   : > { %p861_p8 = pneg %p1019_p7 }
  0x11   : > { %p880_p0 = por %p879_p13, %p878_p12 }
  0x12   : > { %p873_p10 = pnand %p871_p9, %p861_p8 }
  0x14   : > { %p874_p11 = pneg %p873_p10 }
  0x16   : > { %p881_p2 = pnand %p880_p0, %p874_p11 }
  0x18   : > { %884 = shalt.err (!%p881_p2)
}
  0x19   : > { %s954_s27 = smov 128   ;;  %s955_s28 = smov 8  }
  0x1a   : > { %816 = dma.hbm_to_vmem [thread:$0]  (!%p1019_p7), %s1250_s1, 2048, %s129_s21, [#allocation5], %s954_s27, %s954_s27, %s955_s28  }
  0x1b   : > { %p22_p3 = scmp.eq.s32.totalorder %s21_s25, 0  ;;  %p31_p6 = scmp.ne.s32.totalorder %s947_s14, %s943_s13 }
  0x1c   : > { %p32_p8 = scmp.eq.s32.totalorder %s951_s15, 0  ;;  %p822_p9 = scmp.lt.s32.totalorder %s951_s15, 2 }
  0x1d   : > { %s1044_s4 = scalar_select %p22_p3, %s947_s14, %s24_s24  }
  0x1e   : > { %p33_p10 = por %p32_p8, %p31_p6  ;;  %s145_s5 = sand.u32 1, %s947_s14  }
  0x1f   : > { %s635_s6 = sshll.u32 %s145_s5, 8  ;;  %s646_s7 = sshll.u32 %s951_s15, 12 }
  0x20   : > { %s1051_s10 = scalar_lea.hbm %s1249_s0, %s646_s7  ;;  %s149_s11 = scalar_lea.vmem [#allocation2], %s635_s6 }
  0x21   : > { %s156_s12 = sshll.u32 %s149_s11, 4  ;;  %p1055_p7 = pnand %p822_p9, %p33_p10  ;;  %s1053_s12 = int_to_ptr.vmem [resolvable:$true] %s156_s12 }
  0x22   : > { %s1059_s21 = scalar_lea.sflag [#allocation3], %s145_s5  ;;  %s885_s22 = scalar_lea.hbm %s1051_s10, 4096 }
  0x23   : > { %p886_p11 = scmp.ne.s32.totalorder %s1051_s10, %s885_s22  ;;  %p887_p12 = pneg %p1055_p7 }
  0x24   : > { %s890_s26 = scalar_lea.hbm %s1249_s0, 8192  ;;  %p891_p2 = scmp.lt.s32.totalorder %s1051_s10, %s1249_s0 }
  0x25   : > { %p888_p13 = pnand %p887_p12, %p886_p11  ;;  %p892_p3 = scmp.lt.s32.totalorder %s890_s26, %s885_s22 }
  0x27   : > { %p889_p0 = pneg %p888_p13  ;;  %p893_p6 = por %p892_p3, %p891_p2 }
  0x29   : > { %p894_p8 = pnand %p893_p6, %p889_p0 }
  0x2b   : > { %897 = shalt.err (!%p894_p8)
}
  0x2c   : > { %s898_s5 = scalar_lea.vmem %s1053_s12, 4096  ;;  %s956_s6 = smov [#allocation2]  }
  0x2d   : > { %p899_p9 = scmp.ne.s32.totalorder %s1053_s12, %s898_s5  ;;  %s903_s7 = sshll.u32 %s956_s6, 4  ;;  %s904_s7 = int_to_ptr.vmem [resolvable:$false] %s903_s7 }
  0x2e   : > { %s905_s8 = scalar_lea.vmem %s904_s7, 8192  ;;  %p906_p13 = scmp.lt.s32.totalorder %s1053_s12, %s904_s7 }
  0x2f   : > { %p901_p10 = pnand %p899_p9, %p887_p12  ;;  %p907_p1 = scmp.lt.s32.totalorder %s905_s8, %s898_s5 }
  0x31   : > { %p902_p11 = pneg %p901_p10  ;;  %p908_p4 = por %p907_p1, %p906_p13 }
  0x33   : > { %p909_p5 = pnand %p908_p4, %p902_p11 }
  0x35   : > { %912 = shalt.err (!%p909_p5)
}
  0x36   : > { %820 = dma.hbm_to_vmem [thread:$0]  (!%p1055_p7), %s1051_s10, 4096, %s1053_s12, %s1059_s21, %s954_s27, %s954_s27, %s955_s28  }
  0x37   : > { %p1262_p12 = scmp.ne.s32.totalorder %s1259_s19, 0 }
  0x38   : > { %s170_s9 = sand.u32 (!%p1262_p12), 1, %s943_s13   ;;  %p1263_p1 = scmp.ne.s32.totalorder (!%p1262_p12), %s1258_s18, 0 }
  0x39   : > { %168 = sbr.rel (%p1262_p12) target bundleno = 328 (0x148), region = 32  ;;  %s639_s11 = sshll.u32 (!%p1262_p12), %s170_s9, 8 }
  0x3a   : > { %s171_s22 = scalar_lea.sflag (!%p1262_p12), [#allocation3], %s170_s9  ;;  %s1086_s24 = scalar_lea.vmem (!%p1262_p12), [#allocation2], %s639_s11 }
  0x3e   : > { %930 = dma.done.wait (%p1263_p1), %s171_s22, 4096  }
  0x3f   : > { %932 = vsyncadd (%p1263_p1), %s171_s22, 4294963200  ;;  %p1264_p4 = scmp.ne.s32.totalorder %s1257_s17, 0 }
  0x41   : > { %934 = dma.done.wait (%p1264_p4), [#allocation5], 2048  }
  0x42   : > { %936 = vsyncadd (%p1264_p4), [#allocation5], 4294965248  ;;  %v255_v0 = vld [vmem:[#allocation4 + $0x78] sm:$0xff]  ;;  %v254_v1 = vld [vmem:[#allocation4 + $0x70] sm:$0xff]  ;;  %s641_s17 = sshll.u32 %s630_s16, 5  ;;  %vm520_vm0 = vcmask 64512  }
  0x43   : > { %695 = vmatprep.subr.mxu0 %v255_v0  ;;  %775 = vmatprep.subr.mxu1 %v255_v0  ;;  %v253_v2 = vld [vmem:[#allocation4 + $0x68] sm:$0xff]  ;;  %v252_v3 = vld [vmem:[#allocation4 + $0x60] sm:$0xff]  ;;  %v251_v4 = vld [vmem:[#allocation4 + $0x58] sm:$0xff]  ;;  %p203_p5 = scmp.lt.s32.totalorder %s641_s17, 63 }
  0x44   : > { %696 = vmatpush3.msra.mxu0 %v255_v0  ;;  %791 = vmatpush3.msra.mxu1 %v255_v0  ;;  %v250_v5 = vld [vmem:[#allocation4 + $0x50] sm:$0xff]  ;;  %v249_v6 = vld [vmem:[#allocation4 + $0x48] sm:$0xff]  ;;  %v248_v7 = vld [vmem:[#allocation4 + $0x40] sm:$0xff] }
  0x45   : > { %697 = vmatprep.subr.mxu0 %v254_v1  ;;  %776 = vmatprep.subr.mxu1 %v254_v1  ;;  %v247_v8 = vld [vmem:[#allocation4 + $0x38] sm:$0xff]  ;;  %v246_v9 = vld [vmem:[#allocation4 + $0x30] sm:$0xff]  ;;  %v245_v10 = vld [vmem:[#allocation4 + $0x28] sm:$0xff]  ;;  %s1270_s17 = smov (!%p203_p5, %s641_s17), 63 }
  0x46   : > { %698 = vmatpush3.msra.mxu0 %v254_v1  ;;  %792 = vmatpush3.msra.mxu1 %v254_v1  ;;  %v244_v11 = vld [vmem:[#allocation4 + $0x20] sm:$0xff]  ;;  %v243_v12 = vld [vmem:[#allocation4 + $0x18] sm:$0xff]  ;;  %v242_v13 = vld [vmem:[#allocation4 + $0x10] sm:$0xff]  ;;  %s642_s27 = sshll.u32 %s1270_s17, 3 }
  0x47   : > { %699 = vmatprep.subr.mxu0 %v253_v2  ;;  %777 = vmatprep.subr.mxu1 %v253_v2  ;;  %v241_v14 = vld [vmem:[#allocation4 + $0x8] sm:$0xff]  ;;  %v240_v15 = vld [vmem:[#allocation4] sm:$0xff]  ;;  %v210_v20 = vld [vmem:[%s1086_s24 + $0x10] sm:$0xff]  ;;  %s1140_s12 = scalar_lea.vmem %s1252_s3, %s642_s27 }
  0x48   : > { %700 = vmatpush3.msra.mxu0 %v253_v2  ;;  %793 = vmatpush3.msra.mxu1 %v253_v2  ;;  %v208_v16 = vld [vmem:[%s1086_s24] sm:$0xff]  ;;  %v209_v18 = vld [vmem:[%s1086_s24 + $0x8] sm:$0xff]  ;;  %v226_v21 = vld [vmem:[%s1086_s24 + $0x90] sm:$0xff] }
  0x49   : > { %701 = vmatprep.subr.mxu0 %v252_v3  ;;  %778 = vmatprep.subr.mxu1 %v252_v3  ;;  %v224_v17 = vld [vmem:[%s1086_s24 + $0x80] sm:$0xff]  ;;  %v225_v19 = vld [vmem:[%s1086_s24 + $0x88] sm:$0xff]  ;;  %v211_v22 = vld [vmem:[%s1086_s24 + $0x18] sm:$0xff] }
  0x4a   : > { %702 = vmatpush3.msra.mxu0 %v252_v3  ;;  %794 = vmatpush3.msra.mxu1 %v252_v3  ;;  %v227_v23 = vld [vmem:[%s1086_s24 + $0x98] sm:$0xff]  ;;  %v212_v24 = vld [vmem:[%s1086_s24 + $0x20] sm:$0xff]  ;;  %v213_v26 = vld [vmem:[%s1086_s24 + $0x28] sm:$0xff] }
  0x4b   : > { %703 = vmatprep.subr.mxu0 %v251_v4  ;;  %779 = vmatprep.subr.mxu1 %v251_v4  ;;  %v228_v25 = vld [vmem:[%s1086_s24 + $0xa0] sm:$0xff]  ;;  %v229_v27 = vld [vmem:[%s1086_s24 + $0xa8] sm:$0xff]  ;;  %v214_v28 = vld [vmem:[%s1086_s24 + $0x30] sm:$0xff] }
  0x4c   : > { %704 = vmatpush3.msra.mxu0 %v251_v4  ;;  %795 = vmatpush3.msra.mxu1 %v251_v4  ;;  %v230_v29 = vld [vmem:[%s1086_s24 + $0xb0] sm:$0xff]  ;;  %v215_v30 = vld [vmem:[%s1086_s24 + $0x38] sm:$0xff]  ;;  %v216_v32 = vld [vmem:[%s1086_s24 + $0x40] sm:$0xff] }
  0x4d   : > { %705 = vmatprep.subr.mxu0 %v250_v5  ;;  %780 = vmatprep.subr.mxu1 %v250_v5  ;;  %v231_v31 = vld [vmem:[%s1086_s24 + $0xb8] sm:$0xff]  ;;  %v232_v33 = vld [vmem:[%s1086_s24 + $0xc0] sm:$0xff]  ;;  %v217_v34 = vld [vmem:[%s1086_s24 + $0x48] sm:$0xff] }
  0x4e   : > { %706 = vmatpush3.msra.mxu0 %v250_v5  ;;  %796 = vmatpush3.msra.mxu1 %v250_v5  ;;  %v233_v35 = vld [vmem:[%s1086_s24 + $0xc8] sm:$0xff]  ;;  %v218_v36 = vld [vmem:[%s1086_s24 + $0x50] sm:$0xff]  ;;  %v219_v38 = vld [vmem:[%s1086_s24 + $0x58] sm:$0xff] }
  0x4f   : > { %707 = vmatprep.subr.mxu0 %v249_v6  ;;  %781 = vmatprep.subr.mxu1 %v249_v6  ;;  %v234_v37 = vld [vmem:[%s1086_s24 + $0xd0] sm:$0xff]  ;;  %v235_v39 = vld [vmem:[%s1086_s24 + $0xd8] sm:$0xff]  ;;  %v220_v40 = vld [vmem:[%s1086_s24 + $0x60] sm:$0xff] }
  0x50   : > { %708 = vmatpush3.msra.mxu0 %v249_v6  ;;  %797 = vmatpush3.msra.mxu1 %v249_v6  ;;  %v236_v41 = vld [vmem:[%s1086_s24 + $0xe0] sm:$0xff]  ;;  %v221_v42 = vld [vmem:[%s1086_s24 + $0x68] sm:$0xff]  ;;  %v222_v44 = vld [vmem:[%s1086_s24 + $0x70] sm:$0xff] }
  0x51   : > { %709 = vmatprep.subr.mxu0 %v248_v7  ;;  %782 = vmatprep.subr.mxu1 %v248_v7  ;;  %v237_v43 = vld [vmem:[%s1086_s24 + $0xe8] sm:$0xff]  ;;  %v238_v45 = vld [vmem:[%s1086_s24 + $0xf0] sm:$0xff]  ;;  %v223_v46 = vld [vmem:[%s1086_s24 + $0x78] sm:$0xff] }
  0x52   : > { %710 = vmatpush3.msra.mxu0 %v248_v7  ;;  %798 = vmatpush3.msra.mxu1 %v248_v7  ;;  %v239_v47 = vld [vmem:[%s1086_s24 + $0xf8] sm:$0xff]  ;;  %v1133_v48 = vld [vmem:[%s1251_s2] ss:$0 sm:$0xff] }
  0x53   : > { %711 = vmatprep.subr.mxu0 %v247_v8  ;;  %783 = vmatprep.subr.mxu1 %v247_v8 }
  0x54   : > { %712 = vmatpush3.msra.mxu0 %v247_v8  ;;  %799 = vmatpush3.msra.mxu1 %v247_v8 }
  0x55   : > { %713 = vmatprep.subr.mxu0 %v246_v9  ;;  %784 = vmatprep.subr.mxu1 %v246_v9 }
  0x56   : > { %714 = vmatpush3.msra.mxu0 %v246_v9  ;;  %800 = vmatpush3.msra.mxu1 %v246_v9 }
  0x57   : > { %715 = vmatprep.subr.mxu0 %v245_v10  ;;  %785 = vmatprep.subr.mxu1 %v245_v10 }
  0x58   : > { %716 = vmatpush3.msra.mxu0 %v245_v10  ;;  %801 = vmatpush3.msra.mxu1 %v245_v10 }
  0x59   : > { %717 = vmatprep.subr.mxu0 %v244_v11  ;;  %786 = vmatprep.subr.mxu1 %v244_v11 }
  0x5a   : > { %718 = vmatpush3.msra.mxu0 %v244_v11  ;;  %802 = vmatpush3.msra.mxu1 %v244_v11 }
  0x5b   : > { %719 = vmatprep.subr.mxu0 %v243_v12  ;;  %787 = vmatprep.subr.mxu1 %v243_v12 }
  0x5c   : > { %720 = vmatpush3.msra.mxu0 %v243_v12  ;;  %803 = vmatpush3.msra.mxu1 %v243_v12 }
  0x5d   : > { %721 = vmatprep.subr.mxu0 %v242_v13  ;;  %788 = vmatprep.subr.mxu1 %v242_v13 }
  0x5e   : > { %722 = vmatpush3.msra.mxu0 %v242_v13  ;;  %804 = vmatpush3.msra.mxu1 %v242_v13 }
  0x5f   : > { %723 = vmatprep.subr.mxu0 %v241_v14  ;;  %789 = vmatprep.subr.mxu1 %v241_v14 }
  0x60   : > { %724 = vmatpush3.msra.mxu0 %v241_v14  ;;  %805 = vmatpush3.msra.mxu1 %v241_v14 }
  0x61   : > { %725 = vmatprep.subr.mxu0 %v240_v15  ;;  %790 = vmatprep.subr.mxu1 %v240_v15 }
  0x62   : > { %726 = vmatpush3.msra.mxu0 %v240_v15  ;;  %806 = vmatpush3.msra.mxu1 %v240_v15 }
  0x63   : > { %727 = vmatprep.mubr.f32.mxu0 %v208_v16  ;;  %751 = vmatprep.mubr.f32.mxu1 %v224_v17 }
  0x64   : > { %728 = vmatmul.mubr.f32.vlgmr.msra.gmra.mxu0 %v209_v18  ;;  %752 = vmatmul.mubr.f32.vlgmr.msra.gmra.mxu1 %v225_v19 }
  0x65   : > { %730 = vmatprep.mubr.f32.mxu0 %v210_v20  ;;  %754 = vmatprep.mubr.f32.mxu1 %v226_v21 }
  0x68   : > { %731 = vmatmul.mubr.f32.gmra.mxu0 %v211_v22  ;;  %755 = vmatmul.mubr.f32.gmra.mxu1 %v227_v23 }
  0x69   : > { %733 = vmatprep.mubr.f32.mxu0 %v212_v24  ;;  %757 = vmatprep.mubr.f32.mxu1 %v228_v25 }
  0x6c   : > { %734 = vmatmul.mubr.f32.gmra.mxu0 %v213_v26  ;;  %758 = vmatmul.mubr.f32.gmra.mxu1 %v229_v27 }
  0x6d   : > { %736 = vmatprep.mubr.f32.mxu0 %v214_v28  ;;  %760 = vmatprep.mubr.f32.mxu1 %v230_v29 }
  0x70   : > { %737 = vmatmul.mubr.f32.gmra.mxu0 %v215_v30  ;;  %761 = vmatmul.mubr.f32.gmra.mxu1 %v231_v31 }
  0x71   : > { %739 = vmatprep.mubr.f32.mxu0 %v216_v32  ;;  %763 = vmatprep.mubr.f32.mxu1 %v232_v33 }
  0x74   : > { %740 = vmatmul.mubr.f32.gmra.mxu0 %v217_v34  ;;  %764 = vmatmul.mubr.f32.gmra.mxu1 %v233_v35 }
  0x75   : > { %742 = vmatprep.mubr.f32.mxu0 %v218_v36  ;;  %766 = vmatprep.mubr.f32.mxu1 %v234_v37 }
  0x78   : > { %743 = vmatmul.mubr.f32.gmra.mxu0 %v219_v38  ;;  %767 = vmatmul.mubr.f32.gmra.mxu1 %v235_v39 }
  0x79   : > { %745 = vmatprep.mubr.f32.mxu0 %v220_v40  ;;  %769 = vmatprep.mubr.f32.mxu1 %v236_v41 }
  0x7c   : > { %746 = vmatmul.mubr.f32.gmra.mxu0 %v221_v42  ;;  %770 = vmatmul.mubr.f32.gmra.mxu1 %v237_v43 }
  0x7d   : > { %748 = vmatprep.mubr.f32.mxu0 %v222_v44  ;;  %772 = vmatprep.mubr.f32.mxu1 %v238_v45 }
  0x80   : > { %749 = vmatmul.mubr.f32.gmra.mxu0 %v223_v46  ;;  %773 = vmatmul.mubr.f32.gmra.mxu1 %v239_v47 }
 0x124   : > { %v729_v49 = vpop.f32.mrf.mxu0  ;;  %v753_v50 = vpop.f32.mrf.mxu1 }
 0x125   : > { %v335_v51 = vadd.f32 %v729_v49, %v1133_v48  ;;  %v415_v52 = vadd.f32 %v753_v50, %v1133_v48 }
 0x126   : > { %v329_v53 = vpop.f32.mrf.mxu0  ;;  %v409_v54 = vpop.f32.mrf.mxu1 }
 0x127   : > { %v489_v55 = vmax.f32 %v335_v51, 0.0  ;;  %v505_v56 = vmax.f32 %v415_v52, 0.0  ;;  %v330_v57 = vadd.f32 %v1133_v48, %v329_v53  ;;  %v410_v58 = vadd.f32 %v1133_v48, %v409_v54 }
 0x128   : > { %v732_v59 = vpop.f32.mrf.mxu0  ;;  %v756_v60 = vpop.f32.mrf.mxu1 }
 0x129   : > { %522 = vst.msk [vmem:[%s1140_s12 + $0x8] sm:$0xff] %vm520_vm0, %v489_v55  ;;  %538 = vst.msk [vmem:[%s1140_s12 + $0x88] sm:$0xff] %vm520_vm0, %v505_v56  ;;  %v488_v61 = vmax.f32 %v330_v57, 0.0  ;;  %v504_v62 = vmax.f32 %v410_v58, 0.0  ;;  %v345_v63 = vadd.f32 %v732_v59, %v1133_v48  ;;  %v425_v0 = vadd.f32 %v756_v60, %v1133_v48 }
 0x12a   : > { %v339_v1 = vpop.f32.mrf.mxu0  ;;  %v419_v2 = vpop.f32.mrf.mxu1 }
 0x12b   : > { %521 = vst.msk [vmem:[%s1140_s12] sm:$0xff] %vm520_vm0, %v488_v61  ;;  %537 = vst.msk [vmem:[%s1140_s12 + $0x80] sm:$0xff] %vm520_vm0, %v504_v62  ;;  %v491_v3 = vmax.f32 %v345_v63, 0.0  ;;  %v507_v4 = vmax.f32 %v425_v0, 0.0  ;;  %v340_v5 = vadd.f32 %v1133_v48, %v339_v1  ;;  %v420_v6 = vadd.f32 %v1133_v48, %v419_v2 }
 0x12c   : > { %v735_v7 = vpop.f32.mrf.mxu0  ;;  %v759_v8 = vpop.f32.mrf.mxu1 }
 0x12d   : > { %524 = vst.msk [vmem:[%s1140_s12 + $0x18] sm:$0xff] %vm520_vm0, %v491_v3  ;;  %540 = vst.msk [vmem:[%s1140_s12 + $0x98] sm:$0xff] %vm520_vm0, %v507_v4  ;;  %v490_v9 = vmax.f32 %v340_v5, 0.0  ;;  %v506_v10 = vmax.f32 %v420_v6, 0.0  ;;  %v355_v11 = vadd.f32 %v735_v7, %v1133_v48  ;;  %v435_v12 = vadd.f32 %v759_v8, %v1133_v48 }
 0x12e   : > { %v349_v13 = vpop.f32.mrf.mxu0  ;;  %v429_v14 = vpop.f32.mrf.mxu1 }
 0x12f   : > { %523 = vst.msk [vmem:[%s1140_s12 + $0x10] sm:$0xff] %vm520_vm0, %v490_v9  ;;  %539 = vst.msk [vmem:[%s1140_s12 + $0x90] sm:$0xff] %vm520_vm0, %v506_v10  ;;  %v493_v15 = vmax.f32 %v355_v11, 0.0  ;;  %v509_v16 = vmax.f32 %v435_v12, 0.0  ;;  %v350_v17 = vadd.f32 %v1133_v48, %v349_v13  ;;  %v430_v18 = vadd.f32 %v1133_v48, %v429_v14 }
 0x130   : > { %v738_v19 = vpop.f32.mrf.mxu0  ;;  %v762_v20 = vpop.f32.mrf.mxu1 }
 0x131   : > { %526 = vst.msk [vmem:[%s1140_s12 + $0x28] sm:$0xff] %vm520_vm0, %v493_v15  ;;  %542 = vst.msk [vmem:[%s1140_s12 + $0xa8] sm:$0xff] %vm520_vm0, %v509_v16  ;;  %v492_v21 = vmax.f32 %v350_v17, 0.0  ;;  %v508_v22 = vmax.f32 %v430_v18, 0.0  ;;  %v365_v23 = vadd.f32 %v738_v19, %v1133_v48  ;;  %v445_v24 = vadd.f32 %v762_v20, %v1133_v48 }
 0x132   : > { %v359_v25 = vpop.f32.mrf.mxu0  ;;  %v439_v26 = vpop.f32.mrf.mxu1 }
 0x133   : > { %525 = vst.msk [vmem:[%s1140_s12 + $0x20] sm:$0xff] %vm520_vm0, %v492_v21  ;;  %541 = vst.msk [vmem:[%s1140_s12 + $0xa0] sm:$0xff] %vm520_vm0, %v508_v22  ;;  %v495_v27 = vmax.f32 %v365_v23, 0.0  ;;  %v511_v28 = vmax.f32 %v445_v24, 0.0  ;;  %v360_v29 = vadd.f32 %v1133_v48, %v359_v25  ;;  %v440_v30 = vadd.f32 %v1133_v48, %v439_v26 }
 0x134   : > { %v741_v31 = vpop.f32.mrf.mxu0  ;;  %v765_v32 = vpop.f32.mrf.mxu1 }
 0x135   : > { %528 = vst.msk [vmem:[%s1140_s12 + $0x38] sm:$0xff] %vm520_vm0, %v495_v27  ;;  %544 = vst.msk [vmem:[%s1140_s12 + $0xb8] sm:$0xff] %vm520_vm0, %v511_v28  ;;  %v494_v33 = vmax.f32 %v360_v29, 0.0  ;;  %v510_v34 = vmax.f32 %v440_v30, 0.0  ;;  %v375_v35 = vadd.f32 %v741_v31, %v1133_v48  ;;  %v455_v36 = vadd.f32 %v765_v32, %v1133_v48 }
 0x136   : > { %v369_v37 = vpop.f32.mrf.mxu0  ;;  %v449_v38 = vpop.f32.mrf.mxu1 }
 0x137   : > { %527 = vst.msk [vmem:[%s1140_s12 + $0x30] sm:$0xff] %vm520_vm0, %v494_v33  ;;  %543 = vst.msk [vmem:[%s1140_s12 + $0xb0] sm:$0xff] %vm520_vm0, %v510_v34  ;;  %v497_v39 = vmax.f32 %v375_v35, 0.0  ;;  %v513_v40 = vmax.f32 %v455_v36, 0.0  ;;  %v370_v41 = vadd.f32 %v1133_v48, %v369_v37  ;;  %v450_v42 = vadd.f32 %v1133_v48, %v449_v38 }
 0x138   : > { %v744_v43 = vpop.f32.mrf.mxu0  ;;  %v768_v44 = vpop.f32.mrf.mxu1 }
 0x139   : > { %530 = vst.msk [vmem:[%s1140_s12 + $0x48] sm:$0xff] %vm520_vm0, %v497_v39  ;;  %546 = vst.msk [vmem:[%s1140_s12 + $0xc8] sm:$0xff] %vm520_vm0, %v513_v40  ;;  %v496_v45 = vmax.f32 %v370_v41, 0.0  ;;  %v512_v46 = vmax.f32 %v450_v42, 0.0  ;;  %v385_v47 = vadd.f32 %v744_v43, %v1133_v48  ;;  %v465_v49 = vadd.f32 %v768_v44, %v1133_v48 }
 0x13a   : > { %v379_v50 = vpop.f32.mrf.mxu0  ;;  %v459_v51 = vpop.f32.mrf.mxu1 }
 0x13b   : > { %529 = vst.msk [vmem:[%s1140_s12 + $0x40] sm:$0xff] %vm520_vm0, %v496_v45  ;;  %545 = vst.msk [vmem:[%s1140_s12 + $0xc0] sm:$0xff] %vm520_vm0, %v512_v46  ;;  %v499_v52 = vmax.f32 %v385_v47, 0.0  ;;  %v515_v53 = vmax.f32 %v465_v49, 0.0  ;;  %v380_v54 = vadd.f32 %v1133_v48, %v379_v50  ;;  %v460_v55 = vadd.f32 %v1133_v48, %v459_v51 }
 0x13c   : > { %v747_v56 = vpop.f32.mrf.mxu0  ;;  %v771_v57 = vpop.f32.mrf.mxu1 }
 0x13d   : > { %532 = vst.msk [vmem:[%s1140_s12 + $0x58] sm:$0xff] %vm520_vm0, %v499_v52  ;;  %548 = vst.msk [vmem:[%s1140_s12 + $0xd8] sm:$0xff] %vm520_vm0, %v515_v53  ;;  %v498_v58 = vmax.f32 %v380_v54, 0.0  ;;  %v514_v59 = vmax.f32 %v460_v55, 0.0  ;;  %v395_v60 = vadd.f32 %v747_v56, %v1133_v48  ;;  %v475_v61 = vadd.f32 %v771_v57, %v1133_v48 }
 0x13e   : > { %v389_v62 = vpop.f32.mrf.mxu0  ;;  %v469_v63 = vpop.f32.mrf.mxu1 }
 0x13f   : > { %531 = vst.msk [vmem:[%s1140_s12 + $0x50] sm:$0xff] %vm520_vm0, %v498_v58  ;;  %547 = vst.msk [vmem:[%s1140_s12 + $0xd0] sm:$0xff] %vm520_vm0, %v514_v59  ;;  %v501_v0 = vmax.f32 %v395_v60, 0.0  ;;  %v517_v1 = vmax.f32 %v475_v61, 0.0  ;;  %v390_v2 = vadd.f32 %v1133_v48, %v389_v62  ;;  %v470_v3 = vadd.f32 %v1133_v48, %v469_v63 }
 0x140   : > { %v750_v4 = vpop.f32.mrf.mxu0  ;;  %v774_v5 = vpop.f32.mrf.mxu1 }
 0x141   : > { %534 = vst.msk [vmem:[%s1140_s12 + $0x68] sm:$0xff] %vm520_vm0, %v501_v0  ;;  %550 = vst.msk [vmem:[%s1140_s12 + $0xe8] sm:$0xff] %vm520_vm0, %v517_v1  ;;  %v500_v6 = vmax.f32 %v390_v2, 0.0  ;;  %v516_v7 = vmax.f32 %v470_v3, 0.0  ;;  %v405_v8 = vadd.f32 %v750_v4, %v1133_v48  ;;  %v485_v9 = vadd.f32 %v774_v5, %v1133_v48 }
 0x142   : > { %v399_v10 = vpop.f32.mrf.mxu0  ;;  %v479_v11 = vpop.f32.mrf.mxu1 }
 0x143   : > { %533 = vst.msk [vmem:[%s1140_s12 + $0x60] sm:$0xff] %vm520_vm0, %v500_v6  ;;  %549 = vst.msk [vmem:[%s1140_s12 + $0xe0] sm:$0xff] %vm520_vm0, %v516_v7  ;;  %v503_v12 = vmax.f32 %v405_v8, 0.0  ;;  %v519_v13 = vmax.f32 %v485_v9, 0.0  ;;  %v400_v14 = vadd.f32 %v1133_v48, %v399_v10  ;;  %v480_v15 = vadd.f32 %v1133_v48, %v479_v11 }
 0x145   : > { %536 = vst.msk [vmem:[%s1140_s12 + $0x78] sm:$0xff] %vm520_vm0, %v503_v12  ;;  %552 = vst.msk [vmem:[%s1140_s12 + $0xf8] sm:$0xff] %vm520_vm0, %v519_v13  ;;  %v502_v16 = vmax.f32 %v400_v14, 0.0  ;;  %v518_v17 = vmax.f32 %v480_v15, 0.0 }
 0x147   : > { %535 = vst.msk [vmem:[%s1140_s12 + $0x70] sm:$0xff] %vm520_vm0, %v502_v16  ;;  %551 = vst.msk [vmem:[%s1140_s12 + $0xf0] sm:$0xff] %vm520_vm0, %v518_v17 }
 0x148 PF: > { %p14_p7 = scmp.ge.s32.totalorder %s1024_s23, 4   ;;  %s1265_s12 = smov %s943_s13 }
 0x149   : > { %s1266_s13 = smov %s947_s14  ;;  %s1267_s14 = smov %s1044_s4 }
 0x14a   : > { %s1268_s15 = smov %s1024_s23  ;;  %16 = sbr.rel (!%p14_p7) target bundleno = 4 (0x4), region = 76 }
 0x14f   :  { %575 = vsyncpa [#allocation3], 1 }
 0x150   :  { %577 = vsyncpa [#allocation3 + $0x1], 1 }
 0x151   :  { %578 = vsyncpa [#allocation5], 1 }

</bundles_post_ra>
